<compile_context>
chip_gen: v6e
topology: v6e:2x2x1
jax: 0.10.0
libtpu: 0.0.40
codegen_flags: <defaults>
</compile_context>

<pallas_src>
import functools

import jax
import jax.numpy as jnp
from jax.experimental import pallas as pl
from jax.experimental.pallas import tpu as pltpu

KH, KW = 3, 2          # conv_3_2 kernel size (fixed by the module)
LANE_PAD = 128         # output lanes padded to a full vreg width


def conv32_kernel(x_ref, bn1_ref, w_ref, bn2_ref, o_ref):
    """Single invocation; the whole batch is resident in VMEM.

    x_ref   : (N, H, W*Cin)      input, channels flattened into lanes
    bn1_ref : (2, W*Cin)         row 0 = folded BN1 scale, row 1 = shift
    w_ref   : (KH, W*Cin, 128)   banded conv weight per kh (lane-padded)
    bn2_ref : (2, 128)           row 0 = folded BN2 scale, row 1 = bias+shift
    o_ref   : (N, Ho, 128)       lane-padded output slab
    """
    n_batch = x_ref.shape[0]
    ho = o_ref.shape[1]

    s1 = bn1_ref[0:1, :]
    b1 = bn1_ref[1:2, :]
    s2 = bn2_ref[0:1, :]
    b2 = bn2_ref[1:2, :]

    for n in range(n_batch):                     # static unroll (N is tiny)
        # BatchNorm2d(in) folded to scale/shift, then Sigmoid (VPU + EUP).
        act = jax.nn.sigmoid(x_ref[n] * s1 + b1)              # (H, W*Cin)

        # 3x2 valid conv = 3 banded MXU matmuls (kw folded into the weight).
        acc = jnp.dot(act[0:ho, :], w_ref[0],
                      preferred_element_type=jnp.float32)      # (Ho, 128)
        for kh in range(1, KH):
            acc = acc + jnp.dot(act[kh:kh + ho, :], w_ref[kh],
                                preferred_element_type=jnp.float32)

        # conv bias + BatchNorm2d(out) folded; Dropout = identity (eval);
        # final Sigmoid.  Full 128-lane, unmasked store.
        o_ref[n] = jax.nn.sigmoid(acc * s2 + b2)


def prepare_conv32_params(params, H, W, eps=1e-5):
    """Fold BN stats / conv bias and build the banded weight.  Call ONCE
    (eval-mode parameters are static), outside the per-call hot path."""
    (gamma1, beta1, mean1, var1, w, b, gamma2, beta2, mean2, var2) = params
    Cout, Cin, kh, kw = w.shape
    assert (kh, kw) == (KH, KW)
    Wo = W - KW + 1

    s1 = (gamma1 / jnp.sqrt(var1 + eps)).astype(jnp.float32)
    sh1 = (beta1 - mean1 * s1).astype(jnp.float32)
    s2 = (gamma2 / jnp.sqrt(var2 + eps)).astype(jnp.float32)
    sh2 = (beta2 - mean2 * s2).astype(jnp.float32)
    bias2 = (b * s2 + sh2).astype(jnp.float32)   # conv bias folded through BN2

    # Per-lane scale/shift matching the (h, w*Cin+ci) / (ho, wo*Cout+co)
    # flattened layouts, packed two rows per input (fewer tiny DMAs).
    bn1 = jnp.stack([jnp.tile(s1, W), jnp.tile(sh1, W)])          # (2, W*Cin)
    pad = LANE_PAD - Wo * Cout
    bn2 = jnp.stack([
        jnp.concatenate([jnp.tile(s2, Wo), jnp.ones((pad,), jnp.float32)]),
        jnp.concatenate([jnp.tile(bias2, Wo), jnp.zeros((pad,), jnp.float32)]),
    ])                                                            # (2, 128)

    # Banded weight per kh:
    #   band[kh, w_in*Cin + ci, wo*Cout + co] = w[co, ci, kh, w_in - wo]
    #   if 0 <= w_in - wo < KW else 0.
    w_t = jnp.transpose(w, (2, 3, 1, 0)).astype(jnp.float32)      # (KH,KW,Cin,Cout)
    diff = jnp.arange(W)[:, None] - jnp.arange(Wo)[None, :]       # (W, Wo)
    mask = (diff >= 0) & (diff < KW)
    gathered = w_t[:, jnp.clip(diff, 0, KW - 1)]                  # (KH,W,Wo,Cin,Cout)
    band = jnp.where(mask[None, :, :, None, None], gathered, 0.0)
    band = band.transpose(0, 1, 3, 2, 4).reshape(KH, W * Cin, Wo * Cout)
    w_band = jnp.pad(band, ((0, 0), (0, 0), (0, pad)))            # (KH, W*Cin, 128)

    return bn1, w_band, bn2


@functools.partial(jax.jit, static_argnums=(2,))
def conv_3_2_forward(x_nchw, prep, cout):
    bn1, w_band, bn2 = prep
    N, Cin, H, W = x_nchw.shape
    Ho, Wo = H - KH + 1, W - KW + 1

    # NCHW -> lane-dense (N, H, W*Cin); column w*Cin + ci = x[n, ci, h, w].
    x_flat = (jnp.transpose(x_nchw, (0, 2, 3, 1))
              .reshape(N, H, W * Cin).astype(jnp.float32))

    out_pad = pl.pallas_call(
        conv32_kernel,
        out_shape=jax.ShapeDtypeStruct((N, Ho, LANE_PAD), jnp.float32),
        in_specs=[pl.BlockSpec(memory_space=pltpu.MemorySpace.VMEM)
                  for _ in range(4)],
        out_specs=pl.BlockSpec(memory_space=pltpu.MemorySpace.VMEM),
    )(x_flat, bn1, w_band, bn2)

    # (N, Ho, 128) -> strip lane padding -> (N, Ho, Wo, Cout) -> NCHW
    out = out_pad[..., :Wo * cout].reshape(N, Ho, Wo, cout)
    return jnp.transpose(out, (0, 3, 1, 2))


def conv_3_2_reference(x_nchw, params, eps=1e-5):
    """Pure-JAX reference of the eval-mode PyTorch forward (NCHW)."""
    (gamma1, beta1, mean1, var1, w, b, gamma2, beta2, mean2, var2) = params

    def bn(x, g, bt, m, v):
        inv = g / jnp.sqrt(v + eps)
        return x * inv[None, :, None, None] + (bt - m * inv)[None, :, None, None]

    y = jax.nn.sigmoid(bn(x_nchw, gamma1, beta1, mean1, var1))
    y = jax.lax.conv_general_dilated(
        y, w, window_strides=(1, 1), padding="VALID",
        dimension_numbers=("NCHW", "OIHW", "NCHW")) + b[None, :, None, None]
    y = bn(y, gamma2, beta2, mean2, var2)
    return jax.nn.sigmoid(y)


if __name__ == "__main__":
    N, Cin, Cout, H, W = 2, 4, 8, 16, 16

    key = jax.random.PRNGKey(0)
    ks = jax.random.split(key, 12)
    gamma1 = 1.0 + 0.1 * jax.random.normal(ks[0], (Cin,), jnp.float32)
    beta1 = 0.1 * jax.random.normal(ks[1], (Cin,), jnp.float32)
    mean1 = 0.05 * jax.random.normal(ks[2], (Cin,), jnp.float32)
    var1 = 0.5 + jnp.abs(jax.random.normal(ks[3], (Cin,), jnp.float32))
    w = 0.2 * jax.random.normal(ks[4], (Cout, Cin, 3, 2), jnp.float32)
    b = 0.1 * jax.random.normal(ks[5], (Cout,), jnp.float32)
    gamma2 = 1.0 + 0.1 * jax.random.normal(ks[6], (Cout,), jnp.float32)
    beta2 = 0.1 * jax.random.normal(ks[7], (Cout,), jnp.float32)
    mean2 = 0.05 * jax.random.normal(ks[8], (Cout,), jnp.float32)
    var2 = 0.5 + jnp.abs(jax.random.normal(ks[9], (Cout,), jnp.float32))
    params = (gamma1, beta1, mean1, var1, w, b, gamma2, beta2, mean2, var2)

    x = jax.random.normal(ks[10], (N, Cin, H, W), jnp.float32)

    # One-time parameter preparation (hoisted out of the forward hot path).
    prep = jax.tree_util.tree_map(jax.block_until_ready,
                                  prepare_conv32_params(params, H=H, W=W))

    out = jax.block_until_ready(conv_3_2_forward(x, prep, Cout))
    ref = jax.block_until_ready(conv_3_2_reference(x, params))

    assert out.shape == (N, Cout, H - 2, W - 1), out.shape
    assert jnp.max(jnp.abs(out - ref)) < 1e-4, float(jnp.max(jnp.abs(out - ref)))
    print("KERNEL_OK")
</pallas_src>

<mosaic_0001>
module attributes {stable_mosaic.version = 11 : i64} {
  func.func @conv32_kernel(%arg0: memref<2x16x64xf32, #tpu.memory_space<vmem>>, %arg1: memref<2x64xf32, #tpu.memory_space<vmem>>, %arg2: memref<3x64x128xf32, #tpu.memory_space<vmem>>, %arg3: memref<2x128xf32, #tpu.memory_space<vmem>>, %arg4: memref<2x14x128xf32, #tpu.memory_space<vmem>>) attributes {dimension_semantics = [], scalar_prefetch = 0 : i64, scratch_operands = 0 : i64, tpu.core_type = #tpu.core_type<tc>} {
    %c0 = arith.constant 0 : index
    %c0_0 = arith.constant 0 : index
    %0 = vector.load %arg1[%c0, %c0_0] : memref<2x64xf32, #tpu.memory_space<vmem>>, vector<1x64xf32>
    %c1 = arith.constant 1 : index
    %c0_1 = arith.constant 0 : index
    %1 = vector.load %arg1[%c1, %c0_1] : memref<2x64xf32, #tpu.memory_space<vmem>>, vector<1x64xf32>
    %c0_2 = arith.constant 0 : index
    %c0_3 = arith.constant 0 : index
    %2 = vector.load %arg3[%c0_2, %c0_3] : memref<2x128xf32, #tpu.memory_space<vmem>>, vector<1x128xf32>
    %c1_4 = arith.constant 1 : index
    %c0_5 = arith.constant 0 : index
    %3 = vector.load %arg3[%c1_4, %c0_5] : memref<2x128xf32, #tpu.memory_space<vmem>>, vector<1x128xf32>
    %c0_6 = arith.constant 0 : index
    %c0_7 = arith.constant 0 : index
    %c0_8 = arith.constant 0 : index
    %4 = vector.load %arg0[%c0_6, %c0_7, %c0_8] : memref<2x16x64xf32, #tpu.memory_space<vmem>>, vector<1x16x64xf32>
    %5 = vector.shape_cast %4 : vector<1x16x64xf32> to vector<16x64xf32>
    %6 = vector.broadcast %0 : vector<1x64xf32> to vector<16x64xf32>
    %7 = arith.mulf %5, %6 : vector<16x64xf32>
    %8 = vector.broadcast %1 : vector<1x64xf32> to vector<16x64xf32>
    %9 = arith.addf %7, %8 : vector<16x64xf32>
    %10 = arith.negf %9 : vector<16x64xf32>
    %11 = math.exp %10 : vector<16x64xf32>
    %cst = arith.constant 1.000000e+00 : f32
    %12 = vector.broadcast %cst : f32 to vector<16x64xf32>
    %13 = arith.addf %12, %11 : vector<16x64xf32>
    %14 = arith.divf %12, %13 : vector<16x64xf32>
    %15 = vector.extract_strided_slice %14 {offsets = [0, 0], sizes = [14, 64], strides = [1, 1]} : vector<16x64xf32> to vector<14x64xf32>
    %c0_9 = arith.constant 0 : index
    %c0_10 = arith.constant 0 : index
    %c0_11 = arith.constant 0 : index
    %16 = vector.load %arg2[%c0_9, %c0_10, %c0_11] : memref<3x64x128xf32, #tpu.memory_space<vmem>>, vector<1x64x128xf32>
    %17 = vector.shape_cast %16 : vector<1x64x128xf32> to vector<64x128xf32>
    %cst_12 = arith.constant dense<0.000000e+00> : vector<14x128xf32>
    %18 = tpu.matmul %15, %17, %cst_12 {dimension_numbers = #tpu.dot_dimension_numbers<[1], [0], [0], [1], [0, 0, 1, 1], [], []>} : vector<14x64xf32>, vector<64x128xf32>, vector<14x128xf32> -> vector<14x128xf32>
    %19 = vector.extract_strided_slice %14 {offsets = [1, 0], sizes = [14, 64], strides = [1, 1]} : vector<16x64xf32> to vector<14x64xf32>
    %c1_13 = arith.constant 1 : index
    %c0_14 = arith.constant 0 : index
    %c0_15 = arith.constant 0 : index
    %20 = vector.load %arg2[%c1_13, %c0_14, %c0_15] : memref<3x64x128xf32, #tpu.memory_space<vmem>>, vector<1x64x128xf32>
    %21 = vector.shape_cast %20 : vector<1x64x128xf32> to vector<64x128xf32>
    %cst_16 = arith.constant dense<0.000000e+00> : vector<14x128xf32>
    %22 = tpu.matmul %19, %21, %cst_16 {dimension_numbers = #tpu.dot_dimension_numbers<[1], [0], [0], [1], [0, 0, 1, 1], [], []>} : vector<14x64xf32>, vector<64x128xf32>, vector<14x128xf32> -> vector<14x128xf32>
    %23 = arith.addf %18, %22 : vector<14x128xf32>
    %24 = vector.extract_strided_slice %14 {offsets = [2, 0], sizes = [14, 64], strides = [1, 1]} : vector<16x64xf32> to vector<14x64xf32>
    %c2 = arith.constant 2 : index
    %c0_17 = arith.constant 0 : index
    %c0_18 = arith.constant 0 : index
    %25 = vector.load %arg2[%c2, %c0_17, %c0_18] : memref<3x64x128xf32, #tpu.memory_space<vmem>>, vector<1x64x128xf32>
    %26 = vector.shape_cast %25 : vector<1x64x128xf32> to vector<64x128xf32>
    %cst_19 = arith.constant dense<0.000000e+00> : vector<14x128xf32>
    %27 = tpu.matmul %24, %26, %cst_19 {dimension_numbers = #tpu.dot_dimension_numbers<[1], [0], [0], [1], [0, 0, 1, 1], [], []>} : vector<14x64xf32>, vector<64x128xf32>, vector<14x128xf32> -> vector<14x128xf32>
    %28 = arith.addf %23, %27 : vector<14x128xf32>
    %29 = vector.broadcast %2 : vector<1x128xf32> to vector<14x128xf32>
    %30 = arith.mulf %28, %29 : vector<14x128xf32>
    %31 = vector.broadcast %3 : vector<1x128xf32> to vector<14x128xf32>
    %32 = arith.addf %30, %31 : vector<14x128xf32>
    %33 = arith.negf %32 : vector<14x128xf32>
    %34 = math.exp %33 : vector<14x128xf32>
    %cst_20 = arith.constant 1.000000e+00 : f32
    %35 = vector.broadcast %cst_20 : f32 to vector<14x128xf32>
    %36 = arith.addf %35, %34 : vector<14x128xf32>
    %37 = arith.divf %35, %36 : vector<14x128xf32>
    %c0_21 = arith.constant 0 : index
    %c0_22 = arith.constant 0 : index
    %c0_23 = arith.constant 0 : index
    %38 = vector.load %arg4[%c0_21, %c0_22, %c0_23] : memref<2x14x128xf32, #tpu.memory_space<vmem>>, vector<1x14x128xf32>
    %39 = vector.shape_cast %38 : vector<1x14x128xf32> to vector<14x128xf32>
    %40 = vector.shape_cast %37 : vector<14x128xf32> to vector<1x14x128xf32>
    tpu.vector_store %arg4[%c0_21, %c0_22, %c0_23], %40 {strides = array<i32>} : memref<2x14x128xf32, #tpu.memory_space<vmem>>, vector<1x14x128xf32>,
    %c1_24 = arith.constant 1 : index
    %c0_25 = arith.constant 0 : index
    %c0_26 = arith.constant 0 : index
    %41 = vector.load %arg0[%c1_24, %c0_25, %c0_26] : memref<2x16x64xf32, #tpu.memory_space<vmem>>, vector<1x16x64xf32>
    %42 = vector.shape_cast %41 : vector<1x16x64xf32> to vector<16x64xf32>
    %43 = vector.broadcast %0 : vector<1x64xf32> to vector<16x64xf32>
    %44 = arith.mulf %42, %43 : vector<16x64xf32>
    %45 = vector.broadcast %1 : vector<1x64xf32> to vector<16x64xf32>
    %46 = arith.addf %44, %45 : vector<16x64xf32>
    %47 = arith.negf %46 : vector<16x64xf32>
    %48 = math.exp %47 : vector<16x64xf32>
    %cst_27 = arith.constant 1.000000e+00 : f32
    %49 = vector.broadcast %cst_27 : f32 to vector<16x64xf32>
    %50 = arith.addf %49, %48 : vector<16x64xf32>
    %51 = arith.divf %49, %50 : vector<16x64xf32>
    %52 = vector.extract_strided_slice %51 {offsets = [0, 0], sizes = [14, 64], strides = [1, 1]} : vector<16x64xf32> to vector<14x64xf32>
    %c0_28 = arith.constant 0 : index
    %c0_29 = arith.constant 0 : index
    %c0_30 = arith.constant 0 : index
    %53 = vector.load %arg2[%c0_28, %c0_29, %c0_30] : memref<3x64x128xf32, #tpu.memory_space<vmem>>, vector<1x64x128xf32>
    %54 = vector.shape_cast %53 : vector<1x64x128xf32> to vector<64x128xf32>
    %cst_31 = arith.constant dense<0.000000e+00> : vector<14x128xf32>
    %55 = tpu.matmul %52, %54, %cst_31 {dimension_numbers = #tpu.dot_dimension_numbers<[1], [0], [0], [1], [0, 0, 1, 1], [], []>} : vector<14x64xf32>, vector<64x128xf32>, vector<14x128xf32> -> vector<14x128xf32>
    %56 = vector.extract_strided_slice %51 {offsets = [1, 0], sizes = [14, 64], strides = [1, 1]} : vector<16x64xf32> to vector<14x64xf32>
    %c1_32 = arith.constant 1 : index
    %c0_33 = arith.constant 0 : index
    %c0_34 = arith.constant 0 : index
    %57 = vector.load %arg2[%c1_32, %c0_33, %c0_34] : memref<3x64x128xf32, #tpu.memory_space<vmem>>, vector<1x64x128xf32>
    %58 = vector.shape_cast %57 : vector<1x64x128xf32> to vector<64x128xf32>
    %cst_35 = arith.constant dense<0.000000e+00> : vector<14x128xf32>
    %59 = tpu.matmul %56, %58, %cst_35 {dimension_numbers = #tpu.dot_dimension_numbers<[1], [0], [0], [1], [0, 0, 1, 1], [], []>} : vector<14x64xf32>, vector<64x128xf32>, vector<14x128xf32> -> vector<14x128xf32>
    %60 = arith.addf %55, %59 : vector<14x128xf32>
    %61 = vector.extract_strided_slice %51 {offsets = [2, 0], sizes = [14, 64], strides = [1, 1]} : vector<16x64xf32> to vector<14x64xf32>
    %c2_36 = arith.constant 2 : index
    %c0_37 = arith.constant 0 : index
    %c0_38 = arith.constant 0 : index
    %62 = vector.load %arg2[%c2_36, %c0_37, %c0_38] : memref<3x64x128xf32, #tpu.memory_space<vmem>>, vector<1x64x128xf32>
    %63 = vector.shape_cast %62 : vector<1x64x128xf32> to vector<64x128xf32>
    %cst_39 = arith.constant dense<0.000000e+00> : vector<14x128xf32>
    %64 = tpu.matmul %61, %63, %cst_39 {dimension_numbers = #tpu.dot_dimension_numbers<[1], [0], [0], [1], [0, 0, 1, 1], [], []>} : vector<14x64xf32>, vector<64x128xf32>, vector<14x128xf32> -> vector<14x128xf32>
    %65 = arith.addf %60, %64 : vector<14x128xf32>
    %66 = vector.broadcast %2 : vector<1x128xf32> to vector<14x128xf32>
    %67 = arith.mulf %65, %66 : vector<14x128xf32>
    %68 = vector.broadcast %3 : vector<1x128xf32> to vector<14x128xf32>
    %69 = arith.addf %67, %68 : vector<14x128xf32>
    %70 = arith.negf %69 : vector<14x128xf32>
    %71 = math.exp %70 : vector<14x128xf32>
    %cst_40 = arith.constant 1.000000e+00 : f32
    %72 = vector.broadcast %cst_40 : f32 to vector<14x128xf32>
    %73 = arith.addf %72, %71 : vector<14x128xf32>
    %74 = arith.divf %72, %73 : vector<14x128xf32>
    %c1_41 = arith.constant 1 : index
    %c0_42 = arith.constant 0 : index
    %c0_43 = arith.constant 0 : index
    %75 = vector.load %arg4[%c1_41, %c0_42, %c0_43] : memref<2x14x128xf32, #tpu.memory_space<vmem>>, vector<1x14x128xf32>
    %76 = vector.shape_cast %75 : vector<1x14x128xf32> to vector<14x128xf32>
    %77 = vector.shape_cast %74 : vector<14x128xf32> to vector<1x14x128xf32>
    tpu.vector_store %arg4[%c1_41, %c0_42, %c0_43], %77 {strides = array<i32>} : memref<2x14x128xf32, #tpu.memory_space<vmem>>, vector<1x14x128xf32>,
    return
  }
}

</mosaic_0001>

<bundles_post_ra>
// kernel: conv_3_2_forward.1
= control target key start
LH: loop header
LB: loop body
LE: loop exit
PB: predicated region body
PF: predicated region fallthrough
CT: control target
= control target key end

     0   :  { %vm70_vm0 = vcmask 523264   ;;  %vm66_vm1 = vcmask 1046528   ;;  %vm238_vm2 = vcmask 1045504   ;;  %s1189_s2 = inlined_call_operand.vmem [shape: f32[3,64,128], index: 2, kind: input, shape index: {}]   ;;  %s1190_s1 = inlined_call_operand.vmem [shape: f32[2,64], index: 1, kind: input, shape index: {}]   ;;  %s1191_s0 = inlined_call_operand.vmem [shape: f32[2,16,64], index: 0, kind: input, shape index: {}]   ;;  %s1192_s3 = inlined_call_operand.vmem [shape: f32[2,128], index: 3, kind: input, shape index: {}]   ;;  %s1193_s4 = inlined_call_operand.vmem [shape: f32[2,14,128], index: 4, kind: output, shape index: {}]  }
   0x1   :  { %v956_v0 = vld [vmem:[%s1189_s2 + $0x78] sm:$0xff]  ;;  %v966_v2 = vld [vmem:[%s1189_s2 + $0x70] sm:$0xff]  ;;  %v980_v4 = vld [vmem:[%s1189_s2 + $0x68] sm:$0xff] }
   0x2   :  { %v961_v1 = vld [vmem:[%s1189_s2 + $0x38] sm:$0xff]  ;;  %782 = vmatprep.subr.mxu0 %v956_v0  ;;  %v973_v3 = vld [vmem:[%s1189_s2 + $0x30] sm:$0xff]  ;;  %v985_v5 = vld [vmem:[%s1189_s2 + $0x28] sm:$0xff] }
   0x3   :  { %801 = vmatprep.subr.mxu1 %v961_v1  ;;  %783 = vmatpush3.msra.mxu0 %v956_v0  ;;  %v994_v6 = vld [vmem:[%s1189_s2 + $0x60] sm:$0xff]  ;;  %v1006_v8 = vld [vmem:[%s1189_s2 + $0x58] sm:$0xff]  ;;  %v22_v13 = vld [vmem:[%s1191_s0 + $0x8] sm:$0xff] }
   0x4   :  { %802 = vmatpush3.msra.mxu1 %v961_v1  ;;  %784 = vmatprep.subr.mxu0 %v966_v2  ;;  %v999_v7 = vld [vmem:[%s1189_s2 + $0x20] sm:$0xff]  ;;  %v1011_v9 = vld [vmem:[%s1189_s2 + $0x18] sm:$0xff]  ;;  %v1034_v16 = vld [vmem:[%s1189_s2 + $0x50] sm:$0xff] }
   0x5   :  { %803 = vmatprep.subr.mxu1 %v973_v3  ;;  %785 = vmatpush3.msra.mxu0 %v966_v2  ;;  %v662_v10 = vld [vmem:[%s1190_s1] ss:$0 sm:$0xff]  ;;  %v663_v11 = vld [vmem:[%s1190_s1 + $0x1] ss:$0 sm:$0xff]  ;;  %v1039_v17 = vld [vmem:[%s1189_s2 + $0x10] sm:$0xff] }
   0x6   :  { %804 = vmatpush3.msra.mxu1 %v973_v3  ;;  %786 = vmatprep.subr.mxu0 %v980_v4  ;;  %v21_v12 = vld [vmem:[%s1191_s0] sm:$0xff]  ;;  %v28_v15 = vmul.f32 %v662_v10, %v22_v13  ;;  %v692_v20 = vld [vmem:[%s1191_s0 + $0x10] sm:$0xff]  ;;  %v693_v21 = vld [vmem:[%s1191_s0 + $0x18] sm:$0xff] }
   0x7   :  { %805 = vmatprep.subr.mxu1 %v985_v5  ;;  %787 = vmatpush3.msra.mxu0 %v980_v4  ;;  %v27_v14 = vmul.f32 %v662_v10, %v21_v12  ;;  %v1054_v22 = vld [vmem:[%s1189_s2 + $0x48] sm:$0xff]  ;;  %v352_v24 = vmul.f32 %v692_v20, %v662_v10  ;;  %v353_v25 = vmul.f32 %v693_v21, %v662_v10  ;;  %v1068_v28 = vld [vmem:[%s1189_s2 + $0x40] sm:$0xff]  ;;  %v1082_v32 = vld [vmem:[%s1189_s2 + $0xb8] sm:$0xff] }
   0x8   :  { %806 = vmatpush3.msra.mxu1 %v985_v5  ;;  %788 = vmatprep.subr.mxu0 %v994_v6  ;;  %v34_v19 = vadd.f32 %v663_v11, %v28_v15  ;;  %v1059_v23 = vld [vmem:[%s1189_s2 + $0x8] sm:$0xff]  ;;  %v1073_v29 = vld [vmem:[%s1189_s2] sm:$0xff]  ;;  %v684_v48 = vld [vmem:[%s1189_s2 + $0xb0] sm:$0xff] }
   0x9   :  { %807 = vmatprep.subr.mxu1 %v999_v7  ;;  %789 = vmatpush3.msra.mxu0 %v994_v6  ;;  %v33_v18 = vadd.f32 %v663_v11, %v27_v14  ;;  %v354_v30 = vadd.f32 %v663_v11, %v352_v24  ;;  %v355_v31 = vadd.f32 %v663_v11, %v353_v25  ;;  %v683_v49 = vld [vmem:[%s1189_s2 + $0xa8] sm:$0xff]  ;;  %v682_v52 = vld [vmem:[%s1189_s2 + $0xa0] sm:$0xff]  ;;  %v681_v55 = vld [vmem:[%s1189_s2 + $0x98] sm:$0xff] }
   0xa   :  { %808 = vmatpush3.msra.mxu1 %v999_v7  ;;  %790 = vmatprep.subr.mxu0 %v1006_v8  ;;  %v665_v27 = vmul.f32 -1.442695, %v34_v19  ;;  %v680_v58 = vld [vmem:[%s1189_s2 + $0x90] sm:$0xff]  ;;  %v679_v60 = vld [vmem:[%s1189_s2 + $0x88] sm:$0xff]  ;;  %v678_v62 = vld [vmem:[%s1189_s2 + $0x80] sm:$0xff] }
   0xb   :  { %809 = vmatprep.subr.mxu1 %v1011_v9  ;;  %791 = vmatpush3.msra.mxu0 %v1006_v8  ;;  %v664_v26 = vmul.f32 -1.442695, %v33_v18  ;;  %v694_v33 = vmul.f32 -1.442695, %v354_v30  ;;  %v695_v34 = vmul.f32 -1.442695, %v355_v31 }
   0xc   :  { %810 = vmatpush3.msra.mxu1 %v1011_v9  ;;  %792 = vmatprep.subr.mxu0 %v1034_v16  ;;  %v689_v11 = vld [vmem:[%s1192_s3 + $0x1] ss:$0 sm:$0xff] }
   0xd   :  { %811 = vmatprep.subr.mxu1 %v1039_v17  ;;  %793 = vmatpush3.msra.mxu0 %v1034_v16  ;;  %896 = vpow2.f32 %v664_v26 }
   0xe   :  { %812 = vmatpush3.msra.mxu1 %v1039_v17  ;;  %794 = vmatprep.subr.mxu0 %v1054_v22  ;;  %898 = vpow2.f32 %v665_v27 }
   0xf   :  { %813 = vmatprep.subr.mxu1 %v1059_v23  ;;  %795 = vmatpush3.msra.mxu0 %v1054_v22  ;;  %900 = vpow2.f32 %v694_v33 }
  0x10   :  { %814 = vmatpush3.msra.mxu1 %v1059_v23  ;;  %796 = vmatprep.subr.mxu0 %v1068_v28  ;;  %902 = vpow2.f32 %v695_v34 }
  0x11   :  { %815 = vmatprep.subr.mxu1 %v1073_v29  ;;  %797 = vmatpush3.msra.mxu0 %v1068_v28 }
  0x12   :  { %816 = vmatpush3.msra.mxu1 %v1073_v29  ;;  %820 = vmatprep.subr.mxu0 %v1082_v32 }
  0x13   :  { %839 = vmatprep.subr.mxu1 %v956_v0 }
  0x1a   :  { %v897_v35 = vpop.eup %896 }
  0x1b   :  { %v899_v36 = vpop.eup %898  ;;  %v41_v37 = vadd.f32 1.0, %v897_v35 }
  0x1c   :  { %v42_v38 = vadd.f32 1.0, %v899_v36  ;;  %v901_v39 = vpop.eup %900 }
  0x1d   :  { %904 = vrcp.f32 %v41_v37  ;;  %v903_v40 = vpop.eup %902  ;;  %v362_v41 = vadd.f32 1.0, %v901_v39 }
  0x1e   :  { %906 = vrcp.f32 %v42_v38  ;;  %v363_v42 = vadd.f32 1.0, %v903_v40 }
  0x1f   :  { %908 = vrcp.f32 %v362_v41 }
  0x20   :  { %910 = vrcp.f32 %v363_v42 }
  0x2a   :  { %v905_v43 = vpop.eup %904 }
  0x2b   :  { %v907_v44 = vpop.eup %906  ;;  %v67_v45 = vrot.slane %v905_v43, 1  ;;  %817 = vmatprep.mubr.msk.f32.mxu1 %vm70_vm0, %v905_v43  ;;  %v239_v53 = vrot.slane %v905_v43, 2 }
  0x2c   :  { %v68_v46 = vrot.slane %v907_v44, 1  ;;  %818 = vmatmul.mubr.msk.f32.vlgmr.msra.gmra.mxu1 %vm70_vm0, %v907_v44  ;;  %v1107_v50 = vpop.eup %908  ;;  %v240_v54 = vrot.slane %v907_v44, 2 }
  0x2d   :  { %840 = vmatpush3.msra.mxu1 %v956_v0  ;;  %v1110_v51 = vpop.eup %910  ;;  %v386_v56 = vrot.slane %v1107_v50, 1  ;;  %v555_v63 = vrot.slane %v1107_v50, 2 }
  0x2e   :  { %v69_v47 = vsel %vm66_vm1, %v67_v45, %v68_v46  ;;  %841 = vmatprep.subr.mxu1 %v966_v2  ;;  %v387_v57 = vrot.slane %v1110_v51, 1  ;;  %v241_v59 = vsel %vm238_vm2, %v239_v53, %v240_v54  ;;  %v556_v0 = vrot.slane %v1110_v51, 2 }
  0x2f   :  { %798 = vmatprep.mubr.msk.f32.mxu0 %vm70_vm0, %v69_v47  ;;  %842 = vmatpush3.msra.mxu1 %v966_v2 }
  0x30   :  { %799 = vmatmul.mubr.msk.f32.vlgmr.msra.gmra.mxu0 %vm70_vm0, %v68_v46  ;;  %843 = vmatprep.subr.mxu1 %v980_v4  ;;  %v388_v61 = vsel %vm66_vm1, %v386_v56, %v387_v57 }
  0x31   :  { %821 = vmatpush3.msra.mxu0 %v1082_v32  ;;  %844 = vmatpush3.msra.mxu1 %v980_v4 }
  0x32   :  { %822 = vmatprep.subr.mxu0 %v684_v48  ;;  %845 = vmatprep.subr.mxu1 %v994_v6 }
  0x33   :  { %823 = vmatpush3.msra.mxu0 %v684_v48  ;;  %846 = vmatpush3.msra.mxu1 %v994_v6 }
  0x34   :  { %824 = vmatprep.subr.mxu0 %v683_v49  ;;  %847 = vmatprep.subr.mxu1 %v1006_v8 }
  0x35   :  { %825 = vmatpush3.msra.mxu0 %v683_v49  ;;  %848 = vmatpush3.msra.mxu1 %v1006_v8 }
  0x36   :  { %826 = vmatprep.subr.mxu0 %v682_v52  ;;  %849 = vmatprep.subr.mxu1 %v1034_v16 }
  0x37   :  { %827 = vmatpush3.msra.mxu0 %v682_v52  ;;  %850 = vmatpush3.msra.mxu1 %v1034_v16 }
  0x38   :  { %828 = vmatprep.subr.mxu0 %v681_v55  ;;  %851 = vmatprep.subr.mxu1 %v1054_v22 }
  0x39   :  { %829 = vmatpush3.msra.mxu0 %v681_v55  ;;  %852 = vmatpush3.msra.mxu1 %v1054_v22 }
  0x3a   :  { %830 = vmatprep.subr.mxu0 %v680_v58  ;;  %853 = vmatprep.subr.mxu1 %v1068_v28 }
  0x3b   :  { %831 = vmatpush3.msra.mxu0 %v680_v58  ;;  %836 = vmatprep.mubr.msk.f32.mxu0 %vm70_vm0, %v241_v59 }
  0x3c   :  { %832 = vmatprep.subr.mxu0 %v679_v60  ;;  %854 = vmatpush3.msra.mxu1 %v1068_v28 }
  0x3d   :  { %833 = vmatpush3.msra.mxu0 %v679_v60  ;;  %855 = vmatprep.mubr.msk.f32.mxu1 %vm70_vm0, %v388_v61 }
  0x3e   :  { %834 = vmatprep.subr.mxu0 %v678_v62  ;;  %877 = vmatprep.subr.mxu1 %v1082_v32 }
  0x3f   :  { %835 = vmatpush3.msra.mxu0 %v678_v62  ;;  %856 = vmatmul.mubr.msk.f32.vlgmr.msra.gmra.mxu1 %vm70_vm0, %v387_v57 }
  0x40   :  { %837 = vmatmul.mubr.msk.f32.vlgmr.msra.gmra.mxu0 %vm70_vm0, %v240_v54  ;;  %858 = vmatprep.subr.mxu0 %v961_v1 }
  0x41   :  { %859 = vmatpush3.msra.mxu0 %v961_v1  ;;  %878 = vmatpush3.msra.mxu1 %v1082_v32  ;;  %v557_v1 = vsel %vm238_vm2, %v555_v63, %v556_v0 }
  0x42   :  { %860 = vmatprep.subr.mxu0 %v973_v3  ;;  %879 = vmatprep.subr.mxu1 %v684_v48 }
  0x43   :  { %861 = vmatpush3.msra.mxu0 %v973_v3  ;;  %880 = vmatpush3.msra.mxu1 %v684_v48 }
  0x44   :  { %862 = vmatprep.subr.mxu0 %v985_v5  ;;  %881 = vmatprep.subr.mxu1 %v683_v49 }
  0x45   :  { %863 = vmatpush3.msra.mxu0 %v985_v5  ;;  %882 = vmatpush3.msra.mxu1 %v683_v49 }
  0x46   :  { %864 = vmatprep.subr.mxu0 %v999_v7  ;;  %883 = vmatprep.subr.mxu1 %v682_v52 }
  0x47   :  { %865 = vmatpush3.msra.mxu0 %v999_v7  ;;  %884 = vmatpush3.msra.mxu1 %v682_v52  ;;  %v688_v7 = vld [vmem:[%s1192_s3] ss:$0 sm:$0xff] }
  0x48   :  { %866 = vmatprep.subr.mxu0 %v1011_v9  ;;  %885 = vmatprep.subr.mxu1 %v681_v55 }
  0x49   :  { %867 = vmatpush3.msra.mxu0 %v1011_v9  ;;  %886 = vmatpush3.msra.mxu1 %v681_v55 }
  0x4a   :  { %868 = vmatprep.subr.mxu0 %v1039_v17  ;;  %887 = vmatprep.subr.mxu1 %v680_v58 }
  0x4b   :  { %869 = vmatpush3.msra.mxu0 %v1039_v17  ;;  %888 = vmatpush3.msra.mxu1 %v680_v58 }
  0x4c   :  { %870 = vmatprep.subr.mxu0 %v1059_v23  ;;  %889 = vmatprep.subr.mxu1 %v679_v60 }
  0x4d   :  { %871 = vmatpush3.msra.mxu0 %v1059_v23  ;;  %890 = vmatpush3.msra.mxu1 %v679_v60 }
  0x4e   :  { %872 = vmatprep.subr.mxu0 %v1073_v29  ;;  %891 = vmatprep.subr.mxu1 %v678_v62 }
  0x4f   :  { %873 = vmatpush3.msra.mxu0 %v1073_v29  ;;  %874 = vmatprep.mubr.msk.f32.mxu0 %vm70_vm0, %v1107_v50 }
  0x50   :  { %892 = vmatpush3.msra.mxu1 %v678_v62  ;;  %893 = vmatprep.mubr.msk.f32.mxu1 %vm70_vm0, %v557_v1 }
  0x51   :  { %875 = vmatmul.mubr.msk.f32.vlgmr.msra.gmra.mxu0 %vm70_vm0, %v1110_v51  ;;  %894 = vmatmul.mubr.msk.f32.vlgmr.msra.gmra.mxu1 %vm70_vm0, %v556_v0 }
  0xec   :  { %v819_v3 = vpop.f32.mrf.mxu1 }
  0xee   :  { %v220_v5 = vpop.f32.mrf.mxu1 }
  0xf0   :  { %v800_v2 = vpop.f32.mrf.mxu0 }
  0xf1   :  { %v226_v6 = vadd.f32 %v819_v3, %v800_v2 }
  0xf2   :  { %v141_v4 = vpop.f32.mrf.mxu0 }
  0xf3   :  { %v221_v9 = vadd.f32 %v220_v5, %v141_v4 }
  0xff   :  { %v857_v20 = vpop.f32.mrf.mxu1 }
 0x100   :  { %v838_v8 = vpop.f32.mrf.mxu0 }
 0x101   :  { %v322_v10 = vadd.f32 %v838_v8, %v226_v6  ;;  %v459_v21 = vpop.f32.mrf.mxu1 }
 0x102   :  { %v312_v12 = vpop.f32.mrf.mxu0 }
 0x103   :  { %v328_v13 = vmul.f32 %v688_v7, %v322_v10  ;;  %v321_v14 = vadd.f32 %v312_v12, %v221_v9 }
 0x105   :  { %v334_v15 = vadd.f32 %v689_v11, %v328_v13  ;;  %v327_v16 = vmul.f32 %v688_v7, %v321_v14 }
 0x107   :  { %v691_v17 = vmul.f32 -1.442695, %v334_v15  ;;  %v333_v18 = vadd.f32 %v689_v11, %v327_v16 }
 0x109   :  { %912 = vpow2.f32 %v691_v17  ;;  %v690_v19 = vmul.f32 -1.442695, %v333_v18 }
 0x10b   :  { %914 = vpow2.f32 %v690_v19 }
 0x111   :  { %v876_v22 = vpop.f32.mrf.mxu0  ;;  %v895_v23 = vpop.f32.mrf.mxu1 }
 0x112   :  { %v544_v24 = vadd.f32 %v876_v22, %v857_v20 }
 0x113   :  { %v538_v25 = vpop.f32.mrf.mxu0  ;;  %v628_v28 = vpop.f32.mrf.mxu1 }
 0x114   :  { %v638_v26 = vadd.f32 %v895_v23, %v544_v24  ;;  %v539_v27 = vadd.f32 %v538_v25, %v459_v21 }
 0x116   :  { %v913_v29 = vpop.eup %912  ;;  %v640_v30 = vmul.f32 %v688_v7, %v638_v26  ;;  %v637_v31 = vadd.f32 %v628_v28, %v539_v27 }
 0x117   :  { %v342_v32 = vadd.f32 1.0, %v913_v29 }
 0x118   :  { %v915_v33 = vpop.eup %914  ;;  %v642_v34 = vadd.f32 %v689_v11, %v640_v30  ;;  %v639_v35 = vmul.f32 %v688_v7, %v637_v31 }
 0x119   :  { %916 = vrcp.f32 %v342_v32  ;;  %v341_v36 = vadd.f32 1.0, %v915_v33 }
 0x11a   :  { %v719_v37 = vmul.f32 -1.442695, %v642_v34  ;;  %v641_v38 = vadd.f32 %v689_v11, %v639_v35 }
 0x11b   :  { %918 = vrcp.f32 %v341_v36 }
 0x11c   :  { %920 = vpow2.f32 %v719_v37  ;;  %v718_v39 = vmul.f32 -1.442695, %v641_v38 }
 0x11e   :  { %922 = vpow2.f32 %v718_v39 }
 0x126   :  { %v917_v40 = vpop.eup %916 }
 0x127   :  { %348 = vst [vmem:[%s1193_s4 + $0x8] sm:$0x3f] %v917_v40 }
 0x128   :  { %v919_v41 = vpop.eup %918 }
 0x129   :  { %v921_v42 = vpop.eup %920  ;;  %347 = vst [vmem:[%s1193_s4] sm:$0xff] %v919_v41 }
 0x12a   :  { %v650_v43 = vadd.f32 1.0, %v921_v42 }
 0x12b   :  { %v923_v44 = vpop.eup %922 }
 0x12c   :  { %924 = vrcp.f32 %v650_v43  ;;  %v649_v45 = vadd.f32 1.0, %v923_v44 }
 0x12e   :  { %926 = vrcp.f32 %v649_v45 }
 0x139   :  { %v925_v46 = vpop.eup %924 }
 0x13a   :  { %721 = vst [vmem:[%s1193_s4 + $0x18] sm:$0x3f] %v925_v46 }
 0x13b   :  { %v927_v47 = vpop.eup %926 }
 0x13c   :  { %720 = vst [vmem:[%s1193_s4 + $0x10] sm:$0xff] %v927_v47 }

</bundles_post_ra>
